<compile_context>
chip_gen: v7x
topology: tpu7x:2x2x1
jax: 0.10.0
libtpu: 0.0.40
codegen_flags: <defaults>
</compile_context>

<pallas_src>
import functools

import jax
import jax.numpy as jnp
from jax.experimental import pallas as pl
from jax.experimental.pallas import tpu as pltpu

BN_EPS = 1e-5
PAD = 128        # lane-dense width for all hidden/output dims
TILE_ROWS = 128  # rows per grid step == one BatchNorm mini-batch


def dnn_kernel(x_ref, w1_ref, w_ref, v_ref, o_ref):
    """One 128-row mini-batch through the full 4-layer DNN.

    x_ref : (TILE_ROWS, in_pad)   unpadded input features (lane dim = in_pad)
    w1_ref: (in_pad, PAD)         layer-1 weight, zero-padded to 128 out lanes
    w_ref : (3, PAD, PAD)         layer-2..4 weights, zero-padded
    v_ref : (8, PAD)              row 0 = b4, rows 1..3 = gamma1..3,
                                  rows 4..6 = beta1..3, row 7 unused
    o_ref : (TILE_ROWS, PAD)      lane-dense output (sliced to out_dim outside)
    """
    inv_n = 1.0 / x_ref.shape[0]

    def bn_relu(h, gamma, beta):
        # Training-mode BatchNorm1d (batch stats, biased variance) + ReLU.
        # One-pass fused statistics: var = E[h^2] - mean^2 (clamped at 0).
        s1 = jnp.sum(h, axis=0, keepdims=True)
        s2 = jnp.sum(h * h, axis=0, keepdims=True)
        mean = s1 * inv_n
        var = jnp.maximum(s2 * inv_n - mean * mean, 0.0)
        scale = jax.lax.rsqrt(var + BN_EPS) * gamma   # (1, PAD), folded once
        return jnp.maximum((h - mean) * scale + beta, 0.0)

    # layers 1..3: Linear (bias dropped -- cancelled by BN mean) -> BN -> ReLU
    h = jnp.dot(x_ref[...], w1_ref[...], preferred_element_type=jnp.float32)
    h = bn_relu(h, v_ref[1:2, :], v_ref[4:5, :])
    h = jnp.dot(h, w_ref[0], preferred_element_type=jnp.float32)
    h = bn_relu(h, v_ref[2:3, :], v_ref[5:6, :])
    h = jnp.dot(h, w_ref[1], preferred_element_type=jnp.float32)
    h = bn_relu(h, v_ref[3:4, :], v_ref[6:7, :])

    # layer 4: Linear + bias.  Output last dim is 128 -> unmasked (lane-dense) store.
    o_ref[...] = (jnp.dot(h, w_ref[2], preferred_element_type=jnp.float32)
                  + v_ref[0:1, :])


def pack_params(params):
    """One-time packing (call at init, NOT per forward call).

    Every hidden/output dim is zero-padded to 128 lanes.  Padded gamma/beta
    columns are 0, so padded activations stay exactly 0 through BN/ReLU and
    the real columns match the unpadded math.
    """
    in_dim, h1 = params["w1"].shape
    in_pad = -(-in_dim // 8) * 8   # sublane-align the first contraction dim

    w1_p = jnp.zeros((in_pad, PAD), jnp.float32)
    w1_p = w1_p.at[:in_dim, :h1].set(params["w1"].astype(jnp.float32))

    w_p = jnp.zeros((3, PAD, PAD), jnp.float32)
    for i in range(3):
        w = params[f"w{i + 2}"].astype(jnp.float32)
        w_p = w_p.at[i, : w.shape[0], : w.shape[1]].set(w)

    v_p = jnp.zeros((8, PAD), jnp.float32)
    b4 = params["b4"].reshape(-1).astype(jnp.float32)
    v_p = v_p.at[0, : b4.shape[0]].set(b4)
    for i in range(3):
        g = params[f"g{i + 1}"].reshape(-1).astype(jnp.float32)
        be = params[f"be{i + 1}"].reshape(-1).astype(jnp.float32)
        v_p = v_p.at[1 + i, : g.shape[0]].set(g)
        v_p = v_p.at[4 + i, : be.shape[0]].set(be)
    # NOTE: b1..b3 are intentionally NOT packed -- a Linear bias immediately
    # followed by training-mode BatchNorm is cancelled exactly by the mean.
    return w1_p, w_p, v_p


@functools.partial(jax.jit, static_argnames=("out_dim",))
def dnn_forward(x, w1_p, w_p, v_p, *, out_dim):
    """x: (num_tiles*128, in_dim).  Each 128-row tile is one BN mini-batch."""
    rows, in_dim = x.shape
    assert rows % TILE_ROWS == 0, "batch must be a multiple of 128 rows"
    in_pad = w1_p.shape[0]

    x = x.astype(jnp.float32)
    if in_dim != in_pad:                       # at most 7 zero lanes
        x = jnp.pad(x, ((0, 0), (0, in_pad - in_dim)))

    num_tiles = rows // TILE_ROWS
    out_pad = pl.pallas_call(
        dnn_kernel,
        out_shape=jax.ShapeDtypeStruct((rows, PAD), jnp.float32),
        grid=(num_tiles,),
        in_specs=[
            pl.BlockSpec((TILE_ROWS, in_pad), lambda i: (i, 0)),   # x: tiled
            pl.BlockSpec((in_pad, PAD), lambda i: (0, 0)),         # w1: resident
            pl.BlockSpec((3, PAD, PAD), lambda i: (0, 0, 0)),      # w2..4: resident
            pl.BlockSpec((8, PAD), lambda i: (0, 0)),              # b4/gamma/beta: resident
        ],
        out_specs=pl.BlockSpec((TILE_ROWS, PAD), lambda i: (i, 0)),
        compiler_params=pltpu.CompilerParams(
            dimension_semantics=("parallel",)),
    )(x, w1_p, w_p, v_p)
    return out_pad[:, :out_dim]


def init_params(key, in_dim, h1, h2, h3, out_dim):
    """Deterministic synthetic init (PyTorch-like uniform fan-in scaling)."""
    dims = [(in_dim, h1), (h1, h2), (h2, h3), (h3, out_dim)]
    params = {}
    for i, (din, dout) in enumerate(dims, start=1):
        key, kw, kb = jax.random.split(key, 3)
        bound = 1.0 / (din ** 0.5)
        params[f"w{i}"] = jax.random.uniform(
            kw, (din, dout), jnp.float32, minval=-bound, maxval=bound)
        params[f"b{i}"] = jax.random.uniform(
            kb, (1, dout), jnp.float32, minval=-bound, maxval=bound)
    for i, h in enumerate([h1, h2, h3], start=1):
        params[f"g{i}"] = jnp.ones((1, h), jnp.float32)    # BN gamma default
        params[f"be{i}"] = jnp.zeros((1, h), jnp.float32)  # BN beta default
    return params


def reference_forward(x, params):
    """Pure-JAX reference for ONE mini-batch (training-mode BN, with biases)."""
    h = x
    for i in range(1, 4):
        h = h @ params[f"w{i}"] + params[f"b{i}"]
        mean = jnp.mean(h, axis=0, keepdims=True)
        var = jnp.mean((h - mean) ** 2, axis=0, keepdims=True)
        h = (h - mean) / jnp.sqrt(var + BN_EPS) * params[f"g{i}"] + params[f"be{i}"]
        h = jnp.maximum(h, 0.0)
    return h @ params["w4"] + params["b4"]


# TODO(synk): PyTorch train()-mode BatchNorm1d also updates running_mean /
# running_var buffers as a side effect; only the forward output is reproduced.

if __name__ == "__main__":
    key = jax.random.PRNGKey(0)
    kx, kp = jax.random.split(key)

    # Two independent 128-row mini-batches with the module's small widths.
    num_batches, in_dim, h1, h2, h3, out_dim = 2, 32, 64, 64, 32, 8
    rows = num_batches * TILE_ROWS
    x = jax.random.normal(kx, (rows, in_dim), jnp.float32)
    params = init_params(kp, in_dim, h1, h2, h3, out_dim)

    # Pack once at init; reuse the packed params for every forward call.
    w1_p, w_p, v_p = jax.block_until_ready(pack_params(params))

    out = dnn_forward(x, w1_p, w_p, v_p, out_dim=out_dim)
    out = jax.block_until_ready(out)
    assert out.shape == (rows, out_dim)

    # Each 128-row tile is one BN mini-batch == one call of the PyTorch module.
    for t in range(num_batches):
        sl = slice(t * TILE_ROWS, (t + 1) * TILE_ROWS)
        ref = reference_forward(x[sl], params)
        assert jnp.allclose(out[sl], ref, atol=1e-4, rtol=1e-4), "mismatch vs reference"

    print("KERNEL_OK")
</pallas_src>

<mosaic_0001>
module attributes {stable_mosaic.version = 11 : i64} {
  func.func @dnn_kernel(%arg0: i32, %arg1: memref<128x32xf32, #tpu.memory_space<vmem>>, %arg2: memref<32x128xf32, #tpu.memory_space<vmem>>, %arg3: memref<3x128x128xf32, #tpu.memory_space<vmem>>, %arg4: memref<8x128xf32, #tpu.memory_space<vmem>>, %arg5: memref<128x128xf32, #tpu.memory_space<vmem>>) attributes {dimension_semantics = [#tpu.dimension_semantics<parallel>], iteration_bounds = array<i64: 2>, scalar_prefetch = 0 : i64, scratch_operands = 0 : i64, tpu.core_type = #tpu.core_type<tc>, window_params = [{transform_indices = @transform_0, window_bounds = array<i64: 128, 32>}, {pipeline_mode = #tpu.pipeline_mode<synchronous>, transform_indices = @transform_1, window_bounds = array<i64: 32, 128>}, {pipeline_mode = #tpu.pipeline_mode<synchronous>, transform_indices = @transform_2, window_bounds = array<i64: 3, 128, 128>}, {pipeline_mode = #tpu.pipeline_mode<synchronous>, transform_indices = @transform_3, window_bounds = array<i64: 8, 128>}, {transform_indices = @transform_4, window_bounds = array<i64: 128, 128>}]} {
    %c0 = arith.constant 0 : index
    %c0_0 = arith.constant 0 : index
    %0 = vector.load %arg1[%c0, %c0_0] : memref<128x32xf32, #tpu.memory_space<vmem>>, vector<128x32xf32>
    %c0_1 = arith.constant 0 : index
    %c0_2 = arith.constant 0 : index
    %1 = vector.load %arg2[%c0_1, %c0_2] : memref<32x128xf32, #tpu.memory_space<vmem>>, vector<32x128xf32>
    %cst = arith.constant dense<0.000000e+00> : vector<128x128xf32>
    %2 = tpu.matmul %0, %1, %cst {dimension_numbers = #tpu.dot_dimension_numbers<[1], [0], [0], [1], [0, 0, 1, 1], [], []>} : vector<128x32xf32>, vector<32x128xf32>, vector<128x128xf32> -> vector<128x128xf32>
    %c1 = arith.constant 1 : index
    %c0_3 = arith.constant 0 : index
    %3 = vector.load %arg4[%c1, %c0_3] : memref<8x128xf32, #tpu.memory_space<vmem>>, vector<1x128xf32>
    %c4 = arith.constant 4 : index
    %c0_4 = arith.constant 0 : index
    %4 = vector.load %arg4[%c4, %c0_4] : memref<8x128xf32, #tpu.memory_space<vmem>>, vector<1x128xf32>
    %cst_5 = arith.constant dense<0.000000e+00> : vector<128xf32>
    %5 = vector.multi_reduction <add>, %2, %cst_5 [0] : vector<128x128xf32> to vector<128xf32>
    %6 = vector.shape_cast %5 : vector<128xf32> to vector<1x128xf32>
    %7 = arith.mulf %2, %2 : vector<128x128xf32>
    %cst_6 = arith.constant dense<0.000000e+00> : vector<128xf32>
    %8 = vector.multi_reduction <add>, %7, %cst_6 [0] : vector<128x128xf32> to vector<128xf32>
    %9 = vector.shape_cast %8 : vector<128xf32> to vector<1x128xf32>
    %cst_7 = arith.constant 7.812500e-03 : f32
    %10 = vector.broadcast %cst_7 : f32 to vector<1x128xf32>
    %11 = arith.mulf %6, %10 : vector<1x128xf32>
    %cst_8 = arith.constant 7.812500e-03 : f32
    %12 = vector.broadcast %cst_8 : f32 to vector<1x128xf32>
    %13 = arith.mulf %9, %12 : vector<1x128xf32>
    %14 = arith.mulf %11, %11 : vector<1x128xf32>
    %15 = arith.subf %13, %14 : vector<1x128xf32>
    %cst_9 = arith.constant 0.000000e+00 : f32
    %16 = vector.broadcast %cst_9 : f32 to vector<1x128xf32>
    %17 = arith.maximumf %15, %16 : vector<1x128xf32>
    %cst_10 = arith.constant 9.99999974E-6 : f32
    %18 = vector.broadcast %cst_10 : f32 to vector<1x128xf32>
    %19 = arith.addf %17, %18 : vector<1x128xf32>
    %20 = math.rsqrt %19 : vector<1x128xf32>
    %21 = arith.mulf %20, %3 : vector<1x128xf32>
    %22 = vector.broadcast %11 : vector<1x128xf32> to vector<128x128xf32>
    %23 = arith.subf %2, %22 : vector<128x128xf32>
    %24 = vector.broadcast %21 : vector<1x128xf32> to vector<128x128xf32>
    %25 = arith.mulf %23, %24 : vector<128x128xf32>
    %26 = vector.broadcast %4 : vector<1x128xf32> to vector<128x128xf32>
    %27 = arith.addf %25, %26 : vector<128x128xf32>
    %cst_11 = arith.constant 0.000000e+00 : f32
    %28 = vector.broadcast %cst_11 : f32 to vector<128x128xf32>
    %29 = arith.maximumf %27, %28 : vector<128x128xf32>
    %c0_12 = arith.constant 0 : index
    %c0_13 = arith.constant 0 : index
    %c0_14 = arith.constant 0 : index
    %30 = vector.load %arg3[%c0_12, %c0_13, %c0_14] : memref<3x128x128xf32, #tpu.memory_space<vmem>>, vector<1x128x128xf32>
    %31 = vector.shape_cast %30 : vector<1x128x128xf32> to vector<128x128xf32>
    %cst_15 = arith.constant dense<0.000000e+00> : vector<128x128xf32>
    %32 = tpu.matmul %29, %31, %cst_15 {dimension_numbers = #tpu.dot_dimension_numbers<[1], [0], [0], [1], [0, 0, 1, 1], [], []>} : vector<128x128xf32>, vector<128x128xf32>, vector<128x128xf32> -> vector<128x128xf32>
    %c2 = arith.constant 2 : index
    %c0_16 = arith.constant 0 : index
    %33 = vector.load %arg4[%c2, %c0_16] : memref<8x128xf32, #tpu.memory_space<vmem>>, vector<1x128xf32>
    %c5 = arith.constant 5 : index
    %c0_17 = arith.constant 0 : index
    %34 = vector.load %arg4[%c5, %c0_17] : memref<8x128xf32, #tpu.memory_space<vmem>>, vector<1x128xf32>
    %cst_18 = arith.constant dense<0.000000e+00> : vector<128xf32>
    %35 = vector.multi_reduction <add>, %32, %cst_18 [0] : vector<128x128xf32> to vector<128xf32>
    %36 = vector.shape_cast %35 : vector<128xf32> to vector<1x128xf32>
    %37 = arith.mulf %32, %32 : vector<128x128xf32>
    %cst_19 = arith.constant dense<0.000000e+00> : vector<128xf32>
    %38 = vector.multi_reduction <add>, %37, %cst_19 [0] : vector<128x128xf32> to vector<128xf32>
    %39 = vector.shape_cast %38 : vector<128xf32> to vector<1x128xf32>
    %cst_20 = arith.constant 7.812500e-03 : f32
    %40 = vector.broadcast %cst_20 : f32 to vector<1x128xf32>
    %41 = arith.mulf %36, %40 : vector<1x128xf32>
    %cst_21 = arith.constant 7.812500e-03 : f32
    %42 = vector.broadcast %cst_21 : f32 to vector<1x128xf32>
    %43 = arith.mulf %39, %42 : vector<1x128xf32>
    %44 = arith.mulf %41, %41 : vector<1x128xf32>
    %45 = arith.subf %43, %44 : vector<1x128xf32>
    %cst_22 = arith.constant 0.000000e+00 : f32
    %46 = vector.broadcast %cst_22 : f32 to vector<1x128xf32>
    %47 = arith.maximumf %45, %46 : vector<1x128xf32>
    %cst_23 = arith.constant 9.99999974E-6 : f32
    %48 = vector.broadcast %cst_23 : f32 to vector<1x128xf32>
    %49 = arith.addf %47, %48 : vector<1x128xf32>
    %50 = math.rsqrt %49 : vector<1x128xf32>
    %51 = arith.mulf %50, %33 : vector<1x128xf32>
    %52 = vector.broadcast %41 : vector<1x128xf32> to vector<128x128xf32>
    %53 = arith.subf %32, %52 : vector<128x128xf32>
    %54 = vector.broadcast %51 : vector<1x128xf32> to vector<128x128xf32>
    %55 = arith.mulf %53, %54 : vector<128x128xf32>
    %56 = vector.broadcast %34 : vector<1x128xf32> to vector<128x128xf32>
    %57 = arith.addf %55, %56 : vector<128x128xf32>
    %cst_24 = arith.constant 0.000000e+00 : f32
    %58 = vector.broadcast %cst_24 : f32 to vector<128x128xf32>
    %59 = arith.maximumf %57, %58 : vector<128x128xf32>
    %c1_25 = arith.constant 1 : index
    %c0_26 = arith.constant 0 : index
    %c0_27 = arith.constant 0 : index
    %60 = vector.load %arg3[%c1_25, %c0_26, %c0_27] : memref<3x128x128xf32, #tpu.memory_space<vmem>>, vector<1x128x128xf32>
    %61 = vector.shape_cast %60 : vector<1x128x128xf32> to vector<128x128xf32>
    %cst_28 = arith.constant dense<0.000000e+00> : vector<128x128xf32>
    %62 = tpu.matmul %59, %61, %cst_28 {dimension_numbers = #tpu.dot_dimension_numbers<[1], [0], [0], [1], [0, 0, 1, 1], [], []>} : vector<128x128xf32>, vector<128x128xf32>, vector<128x128xf32> -> vector<128x128xf32>
    %c3 = arith.constant 3 : index
    %c0_29 = arith.constant 0 : index
    %63 = vector.load %arg4[%c3, %c0_29] : memref<8x128xf32, #tpu.memory_space<vmem>>, vector<1x128xf32>
    %c6 = arith.constant 6 : index
    %c0_30 = arith.constant 0 : index
    %64 = vector.load %arg4[%c6, %c0_30] : memref<8x128xf32, #tpu.memory_space<vmem>>, vector<1x128xf32>
    %cst_31 = arith.constant dense<0.000000e+00> : vector<128xf32>
    %65 = vector.multi_reduction <add>, %62, %cst_31 [0] : vector<128x128xf32> to vector<128xf32>
    %66 = vector.shape_cast %65 : vector<128xf32> to vector<1x128xf32>
    %67 = arith.mulf %62, %62 : vector<128x128xf32>
    %cst_32 = arith.constant dense<0.000000e+00> : vector<128xf32>
    %68 = vector.multi_reduction <add>, %67, %cst_32 [0] : vector<128x128xf32> to vector<128xf32>
    %69 = vector.shape_cast %68 : vector<128xf32> to vector<1x128xf32>
    %cst_33 = arith.constant 7.812500e-03 : f32
    %70 = vector.broadcast %cst_33 : f32 to vector<1x128xf32>
    %71 = arith.mulf %66, %70 : vector<1x128xf32>
    %cst_34 = arith.constant 7.812500e-03 : f32
    %72 = vector.broadcast %cst_34 : f32 to vector<1x128xf32>
    %73 = arith.mulf %69, %72 : vector<1x128xf32>
    %74 = arith.mulf %71, %71 : vector<1x128xf32>
    %75 = arith.subf %73, %74 : vector<1x128xf32>
    %cst_35 = arith.constant 0.000000e+00 : f32
    %76 = vector.broadcast %cst_35 : f32 to vector<1x128xf32>
    %77 = arith.maximumf %75, %76 : vector<1x128xf32>
    %cst_36 = arith.constant 9.99999974E-6 : f32
    %78 = vector.broadcast %cst_36 : f32 to vector<1x128xf32>
    %79 = arith.addf %77, %78 : vector<1x128xf32>
    %80 = math.rsqrt %79 : vector<1x128xf32>
    %81 = arith.mulf %80, %63 : vector<1x128xf32>
    %82 = vector.broadcast %71 : vector<1x128xf32> to vector<128x128xf32>
    %83 = arith.subf %62, %82 : vector<128x128xf32>
    %84 = vector.broadcast %81 : vector<1x128xf32> to vector<128x128xf32>
    %85 = arith.mulf %83, %84 : vector<128x128xf32>
    %86 = vector.broadcast %64 : vector<1x128xf32> to vector<128x128xf32>
    %87 = arith.addf %85, %86 : vector<128x128xf32>
    %cst_37 = arith.constant 0.000000e+00 : f32
    %88 = vector.broadcast %cst_37 : f32 to vector<128x128xf32>
    %89 = arith.maximumf %87, %88 : vector<128x128xf32>
    %c2_38 = arith.constant 2 : index
    %c0_39 = arith.constant 0 : index
    %c0_40 = arith.constant 0 : index
    %90 = vector.load %arg3[%c2_38, %c0_39, %c0_40] : memref<3x128x128xf32, #tpu.memory_space<vmem>>, vector<1x128x128xf32>
    %91 = vector.shape_cast %90 : vector<1x128x128xf32> to vector<128x128xf32>
    %cst_41 = arith.constant dense<0.000000e+00> : vector<128x128xf32>
    %92 = tpu.matmul %89, %91, %cst_41 {dimension_numbers = #tpu.dot_dimension_numbers<[1], [0], [0], [1], [0, 0, 1, 1], [], []>} : vector<128x128xf32>, vector<128x128xf32>, vector<128x128xf32> -> vector<128x128xf32>
    %c0_42 = arith.constant 0 : index
    %c0_43 = arith.constant 0 : index
    %93 = vector.load %arg4[%c0_42, %c0_43] : memref<8x128xf32, #tpu.memory_space<vmem>>, vector<1x128xf32>
    %94 = vector.broadcast %93 : vector<1x128xf32> to vector<128x128xf32>
    %95 = arith.addf %92, %94 : vector<128x128xf32>
    %c0_44 = arith.constant 0 : index
    %c0_45 = arith.constant 0 : index
    %96 = vector.load %arg5[%c0_44, %c0_45] : memref<128x128xf32, #tpu.memory_space<vmem>>, vector<128x128xf32>
    tpu.vector_store %arg5[%c0_44, %c0_45], %95 {strides = array<i32>} : memref<128x128xf32, #tpu.memory_space<vmem>>, vector<128x128xf32>,
    return
  }
  func.func @transform_0(%arg0: i32) -> (i32, i32) {
    %c0_i32 = arith.constant 0 : i32
    %c0_i32_0 = arith.constant 0 : i32
    return %arg0, %c0_i32 : i32, i32
  }
  func.func @transform_1(%arg0: i32) -> (i32, i32) {
    %c0_i32 = arith.constant 0 : i32
    %c0_i32_0 = arith.constant 0 : i32
    %c0_i32_1 = arith.constant 0 : i32
    return %c0_i32, %c0_i32_0 : i32, i32
  }
  func.func @transform_2(%arg0: i32) -> (i32, i32, i32) {
    %c0_i32 = arith.constant 0 : i32
    %c0_i32_0 = arith.constant 0 : i32
    %c0_i32_1 = arith.constant 0 : i32
    %c0_i32_2 = arith.constant 0 : i32
    return %c0_i32, %c0_i32_0, %c0_i32_1 : i32, i32, i32
  }
  func.func @transform_3(%arg0: i32) -> (i32, i32) {
    %c0_i32 = arith.constant 0 : i32
    %c0_i32_0 = arith.constant 0 : i32
    %c0_i32_1 = arith.constant 0 : i32
    return %c0_i32, %c0_i32_0 : i32, i32
  }
  func.func @transform_4(%arg0: i32) -> (i32, i32) {
    %c0_i32 = arith.constant 0 : i32
    %c0_i32_0 = arith.constant 0 : i32
    return %arg0, %c0_i32 : i32, i32
  }
}

</mosaic_0001>

<bundles_post_ra>
// kernel: dnn_forward.1
= control target key start
LH: loop header
LB: loop body
LE: loop exit
PB: predicated region body
PF: predicated region fallthrough
CT: control target
= control target key end

     0   :  { %9 = vsyncpa [#allocation3], 0  ;;  %s1988_s15 = smov 0   ;;  %s2434_s0 = inlined_call_operand.vmem [shape: f32[256,32], index: 0, kind: input, shape index: {}]   ;;  %s2435_s1 = inlined_call_operand.vmem [shape: f32[32,128], index: 1, kind: input, shape index: {}]   ;;  %s2436_s2 = inlined_call_operand.hbm [shape: f32[3,128,128], index: 2, kind: input, shape index: {}]   ;;  %s2437_s3 = inlined_call_operand.vmem [shape: f32[8,128], index: 3, kind: input, shape index: {}]   ;;  %s2438_s4 = inlined_call_operand.vmem [shape: f32[256,128], index: 4, kind: output, shape index: {}]  }
   0x1 LB: > { %s1424_s16 = sadd.s32 4294967295, %s1958_s15   ;;  %p1426_p0 = scmp.ge.s32.totalorder %s1958_s15, 1  ;;  %s1958_s15 = sphi %s1988_s15, %s15_s15  }
   0x2   : > { %p135_p1 = scmp.lt.s32.totalorder %s1958_s15, 3  ;;  %s1960_s17 = smov [#allocation2]  }
   0x3   : > { %s150_s18 = sshll.u32 %s1960_s17, 4  ;;  %p2002_p3 = scmp.eq.s32.totalorder %s1424_s16, 0  ;;  %s151_s18 = int_to_ptr.vmem [resolvable:$true] %s150_s18 }
   0x4   : > { %p1996_p2 = pnand %p1426_p0, %p135_p1  ;;  %s1920_s24 = scalar_lea.hbm %s2436_s2, 6144 }
   0x5   : > { %s2443_s20 = scalar_select %p2002_p3, 1, 0 }
   0x6   : > { %s2442_s19 = scalar_select %p1996_p2, 1, 0 }
   0x7   : > { %p1897_p4 = pneg %p1996_p2  ;;  %p1921_p6 = scmp.ne.s32.totalorder %s2436_s2, %s1920_s24 }
   0x8   : > { %p1927_p10 = scmp.lt.u32.totalorder %s1920_s24, %s2436_s2 }
   0x9   : > { %p2010_p5 = pnand %p2002_p3, %p1897_p4 }
   0xb   : > { %p1922_p7 = pneg %p2010_p5 }
   0xd   : > { %p1923_p8 = pnand %p1922_p7, %p1921_p6 }
   0xf   : > { %p1924_p9 = pneg %p1923_p8 }
  0x11   : > { %p1929_p11 = pnand %p1927_p10, %p1924_p9 }
  0x13   : > { %1932 = shalt.err (!%p1929_p11)
}
  0x14   : > { %s1933_s29 = scalar_lea.vmem %s151_s18, 6144  ;;  %p1941_p1 = scmp.lt.s32.totalorder %s151_s18, %s151_s18 }
  0x15   : > { %p1934_p12 = scmp.ne.s32.totalorder %s151_s18, %s1933_s29  ;;  %p1942_p4 = scmp.lt.s32.totalorder %s1933_s29, %s1933_s29 }
  0x17   : > { %p1936_p13 = pnand %p1934_p12, %p1922_p7  ;;  %p1943_p3 = por %p1942_p4, %p1941_p1 }
  0x19   : > { %p1937_p0 = pneg %p1936_p13 }
  0x1b   : > { %p1944_p2 = pnand %p1943_p3, %p1937_p0 }
  0x1d   : > { %1947 = shalt.err (!%p1944_p2)
}
  0x1e   : > { %s1961_s30 = smov 128   ;;  %s1962_s5 = smov 8  }
  0x1f   : > { %1900 = dma.hbm_to_vmem [thread:$0]  (!%p2010_p5), %s2436_s2, 6144, %s151_s18, [#allocation3], %s1961_s30, %s1961_s30, %s1962_s5  }
  0x20   : > { %p2445_p6 = scmp.ne.s32.totalorder %s2442_s19, 0 }
  0x21   : > { %p2446_p8 = scmp.ne.s32.totalorder (!%p2445_p6), %s2443_s20, 0 }
  0x22   : > { %178 = sbr.rel (%p2445_p6) target bundleno = 1152 (0x480), region = 36 }
  0x29   : > { %1953 = dma.done.wait (%p2446_p8), [#allocation3], 6144  }
  0x2a   : > { %1955 = vsyncadd (%p2446_p8), [#allocation3], 4294961152  ;;  %s1431_s8 = sshll.u32 %s1424_s16, 4  ;;  %vm236_vm0 = vcmask 261120   ;;  %v232_v0 = vld [vmem:[%s2435_s1] sm:$0xff]  ;;  %v233_v1 = vld [vmem:[%s2435_s1 + $0x8] sm:$0xff] }
  0x2b   : > { %p205_p2 = scmp.lt.s32.totalorder %s1431_s8, 31  ;;  %v234_v2 = vld [vmem:[%s2435_s1 + $0x10] sm:$0xff]  ;;  %v1773_v3 = vpack.c.bf16 %v233_v1, %v232_v0  ;;  %v235_v4 = vld [vmem:[%s2435_s1 + $0x18] sm:$0xff]  ;;  %v570_v22 = vld [vmem:[#allocation2] sm:$0xff] }
  0x2c   : > { %v1777_v6 = vpack.c.bf16 %v235_v4, %v234_v2  ;;  %v571_v23 = vld [vmem:[#allocation2 + $0x8] sm:$0xff]  ;;  %v572_v25 = vld [vmem:[#allocation2 + $0x10] sm:$0xff]  ;;  %v573_v26 = vld [vmem:[#allocation2 + $0x18] sm:$0xff] }
  0x2d   : > { %s2448_s8 = smov (!%p205_p2, %s1431_s8), 31  ;;  %1774 = vmatprep.subr.bf16.mxu0 %v1773_v3  ;;  %v1781_v24 = vpack.c.bf16 %v571_v23, %v570_v22  ;;  %v1785_v27 = vpack.c.bf16 %v573_v26, %v572_v25  ;;  %v574_v28 = vld [vmem:[#allocation2 + $0x20] sm:$0xff]  ;;  %v575_v29 = vld [vmem:[#allocation2 + $0x28] sm:$0xff]  ;;  %v576_v31 = vld [vmem:[#allocation2 + $0x30] sm:$0xff] }
  0x2e   : > { %s1432_s9 = sshll.u32 %s2448_s8, 3  ;;  %1776 = vmatpush3.bf16.msra.mxu0 %v1773_v3  ;;  %v1789_v30 = vpack.c.bf16 %v575_v29, %v574_v28  ;;  %v577_v32 = vld [vmem:[#allocation2 + $0x38] sm:$0xff]  ;;  %v578_v34 = vld [vmem:[#allocation2 + $0x40] sm:$0xff]  ;;  %v579_v35 = vld [vmem:[#allocation2 + $0x48] sm:$0xff] }
  0x2f   : > { %s2046_s12 = scalar_lea.vmem %s2434_s0, %s1432_s9  ;;  %1778 = vmatprep.subr.bf16.mxu0 %v1777_v6  ;;  %1782 = vmatprep.subr.bf16.mxu1 %v1781_v24  ;;  %v1793_v33 = vpack.c.bf16 %v577_v32, %v576_v31  ;;  %v1797_v36 = vpack.c.bf16 %v579_v35, %v578_v34  ;;  %v580_v37 = vld [vmem:[#allocation2 + $0x50] sm:$0xff]  ;;  %v581_v38 = vld [vmem:[#allocation2 + $0x58] sm:$0xff]  ;;  %v582_v40 = vld [vmem:[#allocation2 + $0x60] sm:$0xff]  ;;  %s2413_s14 = scalar_lea.vmem %s2438_s4, %s1432_s9 }
  0x30   : > { %v216_v5 = vld [vmem:[%s2046_s12] sm:$0xff]  ;;  %v217_v7 = vld [vmem:[%s2046_s12 + $0x8] sm:$0xff]  ;;  %v218_v8 = vld [vmem:[%s2046_s12 + $0x10] sm:$0xff]  ;;  %1784 = vmatpush3.bf16.msra.mxu1 %v1781_v24  ;;  %v1801_v39 = vpack.c.bf16 %v581_v38, %v580_v37 }
  0x31   : > { %1581 = vmatprep.mubr.msk.f32.mxu0 %vm236_vm0, %v216_v5  ;;  %v219_v9 = vld [vmem:[%s2046_s12 + $0x18] sm:$0xff]  ;;  %v220_v10 = vld [vmem:[%s2046_s12 + $0x20] sm:$0xff]  ;;  %v221_v11 = vld [vmem:[%s2046_s12 + $0x28] sm:$0xff]  ;;  %1786 = vmatprep.subr.bf16.mxu1 %v1785_v27 }
  0x32   : > { %1780 = vmatpush3.bf16.msra.mxu0 %v1777_v6  ;;  %v222_v12 = vld [vmem:[%s2046_s12 + $0x30] sm:$0xff]  ;;  %v223_v13 = vld [vmem:[%s2046_s12 + $0x38] sm:$0xff]  ;;  %v224_v14 = vld [vmem:[%s2046_s12 + $0x40] sm:$0xff] }
  0x33   : > { %v225_v15 = vld [vmem:[%s2046_s12 + $0x48] sm:$0xff]  ;;  %v226_v16 = vld [vmem:[%s2046_s12 + $0x50] sm:$0xff]  ;;  %v227_v17 = vld [vmem:[%s2046_s12 + $0x58] sm:$0xff] }
  0x34   : > { %v228_v18 = vld [vmem:[%s2046_s12 + $0x60] sm:$0xff]  ;;  %v229_v19 = vld [vmem:[%s2046_s12 + $0x68] sm:$0xff]  ;;  %v230_v20 = vld [vmem:[%s2046_s12 + $0x70] sm:$0xff]  ;;  %1788 = vmatpush3.bf16.msra.mxu1 %v1785_v27 }
  0x35   : > { %1582 = vmatmul.mubr.msk.f32.vlgmr.msra.gmra.mrb[0].mxu0 %vm236_vm0, %v217_v7  ;;  %v231_v21 = vld [vmem:[%s2046_s12 + $0x78] sm:$0xff]  ;;  %1790 = vmatprep.subr.bf16.mxu1 %v1789_v30  ;;  %v583_v41 = vld [vmem:[#allocation2 + $0x68] sm:$0xff]  ;;  %v584_v43 = vld [vmem:[#allocation2 + $0x70] sm:$0xff] }
  0x36   : > { %1584 = vmatprep.mubr.msk.f32.mxu0 %vm236_vm0, %v218_v8  ;;  %v1805_v42 = vpack.c.bf16 %v583_v41, %v582_v40  ;;  %v585_v44 = vld [vmem:[#allocation2 + $0x78] sm:$0xff] }
  0x37   : > { %v1809_v45 = vpack.c.bf16 %v585_v44, %v584_v43 }
  0x38   : > { %1792 = vmatpush3.bf16.msra.mxu1 %v1789_v30 }
  0x39   : > { %1585 = vmatmul.mubr.msk.f32.gmra.mrb[2].mxu0 %vm236_vm0, %v219_v9  ;;  %1794 = vmatprep.subr.bf16.mxu1 %v1793_v33 }
  0x3a   : > { %1587 = vmatprep.mubr.msk.f32.mxu0 %vm236_vm0, %v220_v10 }
  0x3c   : > { %1796 = vmatpush3.bf16.msra.mxu1 %v1793_v33 }
  0x3d   : > { %1588 = vmatmul.mubr.msk.f32.gmra.mrb[4].mxu0 %vm236_vm0, %v221_v11  ;;  %1798 = vmatprep.subr.bf16.mxu1 %v1797_v36 }
  0x3e   : > { %1590 = vmatprep.mubr.msk.f32.mxu0 %vm236_vm0, %v222_v12 }
  0x40   : > { %1800 = vmatpush3.bf16.msra.mxu1 %v1797_v36 }
  0x41   : > { %1591 = vmatmul.mubr.msk.f32.gmra.mrb[6].mxu0 %vm236_vm0, %v223_v13  ;;  %1802 = vmatprep.subr.bf16.mxu1 %v1801_v39 }
  0x42   : > { %1593 = vmatprep.mubr.msk.f32.mxu0 %vm236_vm0, %v224_v14 }
  0x44   : > { %1804 = vmatpush3.bf16.msra.mxu1 %v1801_v39 }
  0x45   : > { %1594 = vmatmul.mubr.msk.f32.gmra.mrb[8].mxu0 %vm236_vm0, %v225_v15  ;;  %1806 = vmatprep.subr.bf16.mxu1 %v1805_v42 }
  0x46   : > { %1596 = vmatprep.mubr.msk.f32.mxu0 %vm236_vm0, %v226_v16 }
  0x48   : > { %1808 = vmatpush3.bf16.msra.mxu1 %v1805_v42 }
  0x49   : > { %1597 = vmatmul.mubr.msk.f32.gmra.mrb[10].mxu0 %vm236_vm0, %v227_v17  ;;  %1810 = vmatprep.subr.bf16.mxu1 %v1809_v45 }
  0x4a   : > { %1599 = vmatprep.mubr.msk.f32.mxu0 %vm236_vm0, %v228_v18 }
  0x4c   : > { %1812 = vmatpush3.bf16.msra.mxu1 %v1809_v45 }
  0x4d   : > { %1600 = vmatmul.mubr.msk.f32.gmra.mrb[12].mxu0 %vm236_vm0, %v229_v19 }
  0x4e   : > { %1602 = vmatprep.mubr.msk.f32.mxu0 %vm236_vm0, %v230_v20 }
  0x51   : > { %1603 = vmatmul.mubr.msk.f32.gmra.mrb[14].mxu0 %vm236_vm0, %v231_v21 }
 0x108   : > { %v2092_v46 = vpop.f32.mrb[0].mxu0 }
 0x109   : > { %v454_v47 = vmul.f32 %v2092_v46, %v2092_v46  ;;  %v2096_v48 = vpop.f32.mrb[1].mxu0 }
 0x10a   : > { %v432_v49 = vadd.f32 %v2092_v46, %v2096_v48  ;;  %v453_v50 = vmul.f32 %v2096_v48, %v2096_v48 }
 0x10c   : > { %v469_v51 = vadd.f32 %v454_v47, %v453_v50  ;;  %v2102_v52 = vpop.f32.mrb[2].mxu0 }
 0x10d   : > { %v2104_v53 = vpop.f32.mrb[3].mxu0  ;;  %v456_v56 = vmul.f32 %v2102_v52, %v2102_v52 }
 0x10e   : > { %v433_v54 = vadd.f32 %v432_v49, %v2104_v53  ;;  %v455_v55 = vmul.f32 %v2104_v53, %v2104_v53 }
 0x110   : > { %v470_v57 = vadd.f32 %v469_v51, %v455_v55  ;;  %v2111_v58 = vpop.f32.mrb[4].mxu0  ;;  %v434_v59 = vadd.f32 %v2102_v52, %v433_v54 }
 0x111   : > { %v2114_v60 = vpop.f32.mrb[5].mxu0  ;;  %v458_v0 = vmul.f32 %v2111_v58, %v2111_v58 }
 0x112   : > { %v435_v61 = vadd.f32 %v434_v59, %v2114_v60  ;;  %v457_v62 = vmul.f32 %v2114_v60, %v2114_v60  ;;  %v471_v63 = vadd.f32 %v470_v57, %v456_v56 }
 0x114   : > { %v472_v1 = vadd.f32 %v471_v63, %v457_v62  ;;  %v2121_v2 = vpop.f32.mrb[6].mxu0  ;;  %v436_v3 = vadd.f32 %v2111_v58, %v435_v61 }
 0x115   : > { %v2124_v4 = vpop.f32.mrb[7].mxu0  ;;  %v460_v8 = vmul.f32 %v2121_v2, %v2121_v2 }
 0x116   : > { %v437_v5 = vadd.f32 %v436_v3, %v2124_v4  ;;  %v459_v6 = vmul.f32 %v2124_v4, %v2124_v4  ;;  %v473_v7 = vadd.f32 %v472_v1, %v458_v0 }
 0x118   : > { %v474_v9 = vadd.f32 %v473_v7, %v459_v6  ;;  %v2131_v10 = vpop.f32.mrb[8].mxu0  ;;  %v438_v11 = vadd.f32 %v2121_v2, %v437_v5 }
 0x119   : > { %v2134_v12 = vpop.f32.mrb[9].mxu0  ;;  %v462_v16 = vmul.f32 %v2131_v10, %v2131_v10 }
 0x11a   : > { %v439_v13 = vadd.f32 %v438_v11, %v2134_v12  ;;  %v461_v14 = vmul.f32 %v2134_v12, %v2134_v12  ;;  %v475_v15 = vadd.f32 %v474_v9, %v460_v8 }
 0x11c   : > { %v476_v17 = vadd.f32 %v475_v15, %v461_v14  ;;  %v2141_v18 = vpop.f32.mrb[10].mxu0  ;;  %v440_v19 = vadd.f32 %v2131_v10, %v439_v13 }
 0x11d   : > { %v2144_v20 = vpop.f32.mrb[11].mxu0  ;;  %v464_v24 = vmul.f32 %v2141_v18, %v2141_v18 }
 0x11e   : > { %v441_v21 = vadd.f32 %v440_v19, %v2144_v20  ;;  %v463_v22 = vmul.f32 %v2144_v20, %v2144_v20  ;;  %v477_v23 = vadd.f32 %v476_v17, %v462_v16 }
 0x120   : > { %v478_v25 = vadd.f32 %v477_v23, %v463_v22  ;;  %v2151_v26 = vpop.f32.mrb[12].mxu0  ;;  %v442_v27 = vadd.f32 %v2141_v18, %v441_v21  ;;  %v1451_v21 = vld [vmem:[%s2437_s3 + $0x4] ss:$0 sm:$0xff] }
 0x121   : > { %v2154_v28 = vpop.f32.mrb[13].mxu0  ;;  %v466_v32 = vmul.f32 %v2151_v26, %v2151_v26 }
 0x122   : > { %v443_v29 = vadd.f32 %v442_v27, %v2154_v28  ;;  %v465_v30 = vmul.f32 %v2154_v28, %v2154_v28  ;;  %v479_v31 = vadd.f32 %v478_v25, %v464_v24 }
 0x124   : > { %v480_v33 = vadd.f32 %v479_v31, %v465_v30  ;;  %v2161_v34 = vpop.f32.mrb[14].mxu0  ;;  %v444_v35 = vadd.f32 %v2151_v26, %v443_v29 }
 0x125   : > { %v421_v36 = vpop.f32.mrb[15].mxu0  ;;  %v468_v40 = vmul.f32 %v2161_v34, %v2161_v34 }
 0x126   : > { %v445_v37 = vadd.f32 %v444_v35, %v421_v36  ;;  %v467_v38 = vmul.f32 %v421_v36, %v421_v36  ;;  %v481_v39 = vadd.f32 %v480_v33, %v466_v32 }
 0x128   : > { %v446_v41 = vadd.f32 %v2161_v34, %v445_v37  ;;  %v482_v42 = vadd.f32 %v481_v39, %v467_v38 }
 0x12a   : > { %v447_v43 = vrot.slane %v446_v41, 4  ;;  %v483_v44 = vadd.f32 %v482_v42, %v468_v40 }
 0x12c   : > { %v448_v45 = vadd.f32 %v447_v43, %v446_v41  ;;  %v484_v47 = vrot.slane %v483_v44, 4 }
 0x12e   : > { %v449_v49 = vrot.slane %v448_v45, 2  ;;  %v485_v50 = vadd.f32 %v484_v47, %v483_v44 }
 0x130   : > { %v450_v51 = vadd.f32 %v449_v49, %v448_v45  ;;  %v486_v54 = vrot.slane %v485_v50, 2 }
 0x132   : > { %v451_v55 = vrot.slane %v450_v51, 1  ;;  %v487_v56 = vadd.f32 %v486_v54, %v485_v50 }
 0x134   : > { %v452_v57 = vadd.f32 %v451_v55, %v450_v51  ;;  %v488_v59 = vrot.slane %v487_v56, 1 }
 0x136   : > { %v489_v61 = vadd.f32 %v488_v59, %v487_v56  ;;  %v490_v62 = vmul.f32 0.0078125, %v452_v57 }
 0x138   : > { %v491_v63 = vmul.f32 0.0078125, %v489_v61  ;;  %v492_v0 = vmul.f32 %v490_v62, %v490_v62  ;;  %v512_v1 = vsub.f32 %v421_v36, %v490_v62  ;;  %v498_v3 = vsub.f32 %v2096_v48, %v490_v62 }
 0x139   : > { %v499_v5 = vsub.f32 %v2092_v46, %v490_v62  ;;  %v500_v6 = vsub.f32 %v2104_v53, %v490_v62  ;;  %v501_v7 = vsub.f32 %v2102_v52, %v490_v62  ;;  %v502_v8 = vsub.f32 %v2114_v60, %v490_v62 }
 0x13a   : > { %v493_v9 = vsub.f32 %v491_v63, %v492_v0  ;;  %v503_v11 = vsub.f32 %v2111_v58, %v490_v62  ;;  %v504_v13 = vsub.f32 %v2124_v4, %v490_v62  ;;  %v505_v14 = vsub.f32 %v2121_v2, %v490_v62  ;;  %v430_v2 = vld [vmem:[%s2437_s3 + $0x1] sm:$0x1] }
 0x13b   : > { %v506_v15 = vsub.f32 %v2134_v12, %v490_v62  ;;  %v507_v16 = vsub.f32 %v2131_v10, %v490_v62  ;;  %v508_v48 = vsub.f32 %v2144_v20, %v490_v62  ;;  %v509_v46 = vsub.f32 %v2141_v18, %v490_v62 }
 0x13c   : > { %v494_v53 = vmax.f32 %v493_v9, 0.0  ;;  %v510_v52 = vsub.f32 %v2154_v28, %v490_v62  ;;  %v511_v60 = vsub.f32 %v2151_v26, %v490_v62  ;;  %v513_v17 = vsub.f32 %v2161_v34, %v490_v62 }
 0x13d   : > { %v514_v4 = vlaneseq }
 0x13e   : > { %v495_v58 = vadd.f32 1e-05, %v494_v53  ;;  %v874_v53 = vld [vmem:[#allocation2 + $0x90] sm:$0xff] }
 0x13f   : > { %v515_v19 = vshrl.u32 %v514_v4, 7 }
 0x140   : > { %1914 = vrsqrt.f32 %v495_v58  ;;  %v877_v58 = vld [vmem:[#allocation2 + $0xa8] sm:$0xff] }
 0x141   : > { %v2185_v10 = vsub.s32 0, %v515_v19  ;;  %v878_v19 = vld [vmem:[#allocation2 + $0xb0] sm:$0xff] }
 0x14a   : > { %v1915_v12 = vpop.eup %1914 }
 0x14b   : > { %v497_v20 = vmul.f32 %v1915_v12, %v430_v2  ;;  %v879_v2 = vld [vmem:[#allocation2 + $0xb8] sm:$0xff] }
 0x14c   : > { %v1825_v12 = vpack.c.bf16 %v879_v2, %v878_v19 }
 0x14d   : > { %v517_v18 = vrot.slane %v497_v20, %v2185_v10  ;;  %v880_v20 = vld [vmem:[#allocation2 + $0xc0] sm:$0xff] }
 0x14f   : > { %v532_v22 = vmul.f32 %v517_v18, %v512_v1  ;;  %v518_v23 = vmul.f32 %v517_v18, %v498_v3  ;;  %v519_v24 = vmul.f32 %v517_v18, %v499_v5  ;;  %v520_v25 = vmul.f32 %v517_v18, %v500_v6 }
 0x150   : > { %v521_v26 = vmul.f32 %v517_v18, %v501_v7  ;;  %v522_v27 = vmul.f32 %v517_v18, %v502_v8  ;;  %v523_v28 = vmul.f32 %v517_v18, %v503_v11  ;;  %v524_v29 = vmul.f32 %v517_v18, %v504_v13 }
 0x151   : > { %v538_v30 = vadd.f32 %v1451_v21, %v518_v23  ;;  %v539_v31 = vadd.f32 %v1451_v21, %v519_v24  ;;  %v540_v32 = vadd.f32 %v1451_v21, %v520_v25  ;;  %v525_v33 = vmul.f32 %v517_v18, %v505_v14  ;;  %v883_v23 = vld [vmem:[#allocation2 + $0xd8] sm:$0xff]  ;;  %v884_v24 = vld [vmem:[#allocation2 + $0xe0] sm:$0xff] }
 0x152   : > { %v541_v36 = vadd.f32 %v1451_v21, %v521_v26  ;;  %v542_v37 = vadd.f32 %v1451_v21, %v522_v27  ;;  %v526_v39 = vmul.f32 %v517_v18, %v506_v15  ;;  %v527_v40 = vmul.f32 %v517_v18, %v507_v16  ;;  %v872_v16 = vld [vmem:[#allocation2 + $0x80] sm:$0xff]  ;;  %v885_v26 = vld [vmem:[#allocation2 + $0xe8] sm:$0xff] }
 0x153   : > { %v554_v34 = vmax.f32 %v538_v30, 0.0  ;;  %v555_v35 = vmax.f32 %v539_v31, 0.0  ;;  %v556_v38 = vmax.f32 %v540_v32, 0.0  ;;  %v528_v41 = vmul.f32 %v517_v18, %v508_v48  ;;  %v873_v48 = vld [vmem:[#allocation2 + $0x88] sm:$0xff] }
 0x154   : > { %v529_v42 = vmul.f32 %v517_v18, %v509_v46  ;;  %v530_v43 = vmul.f32 %v517_v18, %v510_v52  ;;  %v531_v44 = vmul.f32 %v517_v18, %v511_v60  ;;  %v533_v45 = vmul.f32 %v517_v18, %v513_v17  ;;  %v875_v52 = vld [vmem:[#allocation2 + $0x98] sm:$0xff]  ;;  %v876_v17 = vld [vmem:[#allocation2 + $0xa0] sm:$0xff]  ;;  %v881_v18 = vld [vmem:[#allocation2 + $0xc8] sm:$0xff] }
 0x155   : > { %1637 = vmatprep.mubr.f32.mxu1 %v554_v34  ;;  %v557_v47 = vmax.f32 %v541_v36, 0.0  ;;  %v543_v49 = vadd.f32 %v1451_v21, %v523_v28  ;;  %v558_v50 = vmax.f32 %v542_v37, 0.0  ;;  %v544_v51 = vadd.f32 %v1451_v21, %v524_v29  ;;  %v886_v28 = vld [vmem:[#allocation2 + $0xf0] sm:$0xff]  ;;  %v887_v29 = vld [vmem:[#allocation2 + $0xf8] sm:$0xff] }
 0x156   : > { %1638 = vmatmul.mubr.f32.vlgmr.msra.gmra.mrb[0].mxu1 %v555_v35  ;;  %v545_v55 = vadd.f32 %v1451_v21, %v525_v33  ;;  %v546_v57 = vadd.f32 %v1451_v21, %v526_v39  ;;  %v547_v61 = vadd.f32 %v1451_v21, %v527_v40  ;;  %v548_v63 = vadd.f32 %v1451_v21, %v528_v41 }
 0x157   : > { %1640 = vmatprep.mubr.f32.mxu1 %v556_v38  ;;  %v559_v54 = vmax.f32 %v543_v49, 0.0  ;;  %v560_v56 = vmax.f32 %v544_v51, 0.0  ;;  %v549_v1 = vadd.f32 %v1451_v21, %v529_v42  ;;  %v550_v5 = vadd.f32 %v1451_v21, %v530_v43 }
 0x158   : > { %v561_v59 = vmax.f32 %v545_v55, 0.0  ;;  %v562_v62 = vmax.f32 %v546_v57, 0.0  ;;  %v563_v0 = vmax.f32 %v547_v61, 0.0  ;;  %v564_v3 = vmax.f32 %v548_v63, 0.0 }
 0x159   : > { %v565_v6 = vmax.f32 %v549_v1, 0.0  ;;  %v551_v7 = vadd.f32 %v1451_v21, %v531_v44  ;;  %v566_v8 = vmax.f32 %v550_v5, 0.0  ;;  %v552_v9 = vadd.f32 %v1451_v21, %v532_v22  ;;  %v882_v22 = vld [vmem:[#allocation2 + $0xd0] sm:$0xff] }
 0x15a   : > { %1641 = vmatmul.mubr.f32.gmra.mrb[2].mxu1 %v557_v47  ;;  %v553_v13 = vadd.f32 %v1451_v21, %v533_v45  ;;  %v1813_v46 = vpack.c.bf16 %v873_v48, %v872_v16  ;;  %v1817_v60 = vpack.c.bf16 %v875_v52, %v874_v53  ;;  %v1821_v4 = vpack.c.bf16 %v877_v58, %v876_v17 }
 0x15b   : > { %1643 = vmatprep.mubr.f32.mxu1 %v558_v50  ;;  %v567_v11 = vmax.f32 %v551_v7, 0.0  ;;  %v568_v14 = vmax.f32 %v552_v9, 0.0  ;;  %v1829_v21 = vpack.c.bf16 %v881_v18, %v880_v20  ;;  %v1833_v25 = vpack.c.bf16 %v883_v23, %v882_v22 }
 0x15c   : > { %v569_v15 = vmax.f32 %v553_v13, 0.0  ;;  %1814 = vmatprep.subr.bf16.mxu0 %v1813_v46  ;;  %v1837_v27 = vpack.c.bf16 %v885_v26, %v884_v24  ;;  %v1841_v30 = vpack.c.bf16 %v887_v29, %v886_v28 }
 0x15d   : > { %1816 = vmatpush3.bf16.msra.mxu0 %v1813_v46 }
 0x15e   : > { %1644 = vmatmul.mubr.f32.gmra.mrb[4].mxu1 %v559_v54  ;;  %1818 = vmatprep.subr.bf16.mxu0 %v1817_v60 }
 0x15f   : > { %1646 = vmatprep.mubr.f32.mxu1 %v560_v56 }
 0x161   : > { %1820 = vmatpush3.bf16.msra.mxu0 %v1817_v60 }
 0x162   : > { %1647 = vmatmul.mubr.f32.gmra.mrb[6].mxu1 %v561_v59  ;;  %1822 = vmatprep.subr.bf16.mxu0 %v1821_v4 }
 0x163   : > { %1649 = vmatprep.mubr.f32.mxu1 %v562_v62 }
 0x165   : > { %1824 = vmatpush3.bf16.msra.mxu0 %v1821_v4 }
 0x166   : > { %1650 = vmatmul.mubr.f32.gmra.mrb[8].mxu1 %v563_v0  ;;  %1826 = vmatprep.subr.bf16.mxu0 %v1825_v12 }
 0x167   : > { %1652 = vmatprep.mubr.f32.mxu1 %v564_v3 }
 0x169   : > { %1828 = vmatpush3.bf16.msra.mxu0 %v1825_v12 }
 0x16a   : > { %1653 = vmatmul.mubr.f32.gmra.mrb[10].mxu1 %v565_v6  ;;  %1830 = vmatprep.subr.bf16.mxu0 %v1829_v21 }
 0x16b   : > { %1655 = vmatprep.mubr.f32.mxu1 %v566_v8 }
 0x16d   : > { %1832 = vmatpush3.bf16.msra.mxu0 %v1829_v21 }
 0x16e   : > { %1656 = vmatmul.mubr.f32.gmra.mrb[12].mxu1 %v567_v11  ;;  %1834 = vmatprep.subr.bf16.mxu0 %v1833_v25 }
 0x16f   : > { %1658 = vmatprep.mubr.f32.mxu1 %v568_v14 }
 0x171   : > { %1836 = vmatpush3.bf16.msra.mxu0 %v1833_v25 }
 0x172   : > { %1659 = vmatmul.mubr.f32.gmra.mrb[14].mxu1 %v569_v15  ;;  %1838 = vmatprep.subr.bf16.mxu0 %v1837_v27 }
 0x175   : > { %1840 = vmatpush3.bf16.msra.mxu0 %v1837_v27 }
 0x176   : > { %1842 = vmatprep.subr.bf16.mxu0 %v1841_v30 }
 0x179   : > { %1844 = vmatpush3.bf16.msra.mxu0 %v1841_v30 }
 0x229   : > { %v2191_v31 = vpop.f32.mrb[0].mxu1 }
 0x22a   : > { %v755_v32 = vmul.f32 %v2191_v31, %v2191_v31  ;;  %v2195_v33 = vpop.f32.mrb[1].mxu1 }
 0x22b   : > { %v733_v34 = vadd.f32 %v2191_v31, %v2195_v33  ;;  %v754_v35 = vmul.f32 %v2195_v33, %v2195_v33 }
 0x22d   : > { %v770_v36 = vadd.f32 %v755_v32, %v754_v35  ;;  %v2201_v37 = vpop.f32.mrb[2].mxu1 }
 0x22e   : > { %v2203_v38 = vpop.f32.mrb[3].mxu1  ;;  %v757_v41 = vmul.f32 %v2201_v37, %v2201_v37 }
 0x22f   : > { %v734_v39 = vadd.f32 %v733_v34, %v2203_v38  ;;  %v756_v40 = vmul.f32 %v2203_v38, %v2203_v38 }
 0x231   : > { %v771_v42 = vadd.f32 %v770_v36, %v756_v40  ;;  %v2210_v43 = vpop.f32.mrb[4].mxu1  ;;  %v735_v44 = vadd.f32 %v2201_v37, %v734_v39 }
 0x232   : > { %v2213_v45 = vpop.f32.mrb[5].mxu1  ;;  %v759_v51 = vmul.f32 %v2210_v43, %v2210_v43 }
 0x233   : > { %v736_v47 = vadd.f32 %v735_v44, %v2213_v45  ;;  %v758_v49 = vmul.f32 %v2213_v45, %v2213_v45  ;;  %v772_v50 = vadd.f32 %v771_v42, %v757_v41 }
 0x235   : > { %v773_v54 = vadd.f32 %v772_v50, %v758_v49  ;;  %v2220_v55 = vpop.f32.mrb[6].mxu1  ;;  %v737_v56 = vadd.f32 %v2210_v43, %v736_v47 }
 0x236   : > { %v2223_v57 = vpop.f32.mrb[7].mxu1  ;;  %v761_v63 = vmul.f32 %v2220_v55, %v2220_v55 }
 0x237   : > { %v738_v59 = vadd.f32 %v737_v56, %v2223_v57  ;;  %v760_v61 = vmul.f32 %v2223_v57, %v2223_v57  ;;  %v774_v62 = vadd.f32 %v773_v54, %v759_v51 }
 0x239   : > { %v775_v0 = vadd.f32 %v774_v62, %v760_v61  ;;  %v2230_v1 = vpop.f32.mrb[8].mxu1  ;;  %v739_v3 = vadd.f32 %v2220_v55, %v738_v59 }
 0x23a   : > { %v2233_v5 = vpop.f32.mrb[9].mxu1  ;;  %v763_v9 = vmul.f32 %v2230_v1, %v2230_v1 }
 0x23b   : > { %v740_v6 = vadd.f32 %v739_v3, %v2233_v5  ;;  %v762_v7 = vmul.f32 %v2233_v5, %v2233_v5  ;;  %v776_v8 = vadd.f32 %v775_v0, %v761_v63 }
 0x23d   : > { %v777_v11 = vadd.f32 %v776_v8, %v762_v7  ;;  %v2240_v13 = vpop.f32.mrb[10].mxu1  ;;  %v741_v14 = vadd.f32 %v2230_v1, %v740_v6 }
 0x23e   : > { %v2243_v15 = vpop.f32.mrb[11].mxu1  ;;  %v765_v53 = vmul.f32 %v2240_v13, %v2240_v13 }
 0x23f   : > { %v742_v16 = vadd.f32 %v741_v14, %v2243_v15  ;;  %v764_v48 = vmul.f32 %v2243_v15, %v2243_v15  ;;  %v778_v46 = vadd.f32 %v777_v11, %v763_v9 }
 0x241   : > { %v779_v52 = vadd.f32 %v778_v46, %v764_v48  ;;  %v2250_v60 = vpop.f32.mrb[12].mxu1  ;;  %v743_v17 = vadd.f32 %v2240_v13, %v742_v16 }
 0x242   : > { %v2253_v58 = vpop.f32.mrb[13].mxu1  ;;  %v767_v12 = vmul.f32 %v2250_v60, %v2250_v60 }
 0x243   : > { %v744_v4 = vadd.f32 %v743_v17, %v2253_v58  ;;  %v766_v19 = vmul.f32 %v2253_v58, %v2253_v58  ;;  %v780_v2 = vadd.f32 %v779_v52, %v765_v53 }
 0x245   : > { %v781_v20 = vadd.f32 %v780_v2, %v766_v19  ;;  %v2260_v18 = vpop.f32.mrb[14].mxu1  ;;  %v745_v21 = vadd.f32 %v2250_v60, %v744_v4 }
 0x246   : > { %v722_v22 = vpop.f32.mrb[15].mxu1  ;;  %v769_v26 = vmul.f32 %v2260_v18, %v2260_v18 }
 0x247   : > { %v746_v23 = vadd.f32 %v745_v21, %v722_v22  ;;  %v768_v24 = vmul.f32 %v722_v22, %v722_v22  ;;  %v782_v25 = vadd.f32 %v781_v20, %v767_v12 }
 0x249   : > { %v747_v27 = vadd.f32 %v2260_v18, %v746_v23  ;;  %v783_v28 = vadd.f32 %v782_v25, %v768_v24 }
 0x24b   : > { %v748_v29 = vrot.slane %v747_v27, 4  ;;  %v784_v30 = vadd.f32 %v783_v28, %v769_v26 }
 0x24d   : > { %v749_v32 = vadd.f32 %v748_v29, %v747_v27  ;;  %v785_v34 = vrot.slane %v784_v30, 4 }
 0x24f   : > { %v750_v35 = vrot.slane %v749_v32, 2  ;;  %v786_v36 = vadd.f32 %v785_v34, %v784_v30 }
 0x251   : > { %v751_v39 = vadd.f32 %v750_v35, %v749_v32  ;;  %v787_v40 = vrot.slane %v786_v36, 2 }
 0x253   : > { %v752_v41 = vrot.slane %v751_v39, 1  ;;  %v788_v42 = vadd.f32 %v787_v40, %v786_v36 }
 0x255   : > { %v753_v44 = vadd.f32 %v752_v41, %v751_v39  ;;  %v789_v47 = vrot.slane %v788_v42, 1 }
 0x257   : > { %v790_v49 = vadd.f32 %v789_v47, %v788_v42  ;;  %v791_v50 = vmul.f32 0.0078125, %v753_v44 }
 0x259   : > { %v792_v51 = vmul.f32 0.0078125, %v790_v49  ;;  %v793_v54 = vmul.f32 %v791_v50, %v791_v50  ;;  %v813_v56 = vsub.f32 %v722_v22, %v791_v50  ;;  %v799_v59 = vsub.f32 %v2195_v33, %v791_v50 }
 0x25a   : > { %v800_v61 = vsub.f32 %v2191_v31, %v791_v50  ;;  %v801_v62 = vsub.f32 %v2203_v38, %v791_v50  ;;  %v802_v63 = vsub.f32 %v2201_v37, %v791_v50  ;;  %v803_v0 = vsub.f32 %v2213_v45, %v791_v50 }
 0x25b   : > { %v794_v3 = vsub.f32 %v792_v51, %v793_v54  ;;  %v804_v6 = vsub.f32 %v2210_v43, %v791_v50  ;;  %v805_v7 = vsub.f32 %v2223_v57, %v791_v50  ;;  %v806_v8 = vsub.f32 %v2220_v55, %v791_v50  ;;  %v731_v55 = vld [vmem:[%s2437_s3 + $0x2] sm:$0x1] }
 0x25c   : > { %v807_v9 = vsub.f32 %v2233_v5, %v791_v50  ;;  %v808_v11 = vsub.f32 %v2230_v1, %v791_v50  ;;  %v809_v33 = vsub.f32 %v2243_v15, %v791_v50  ;;  %v810_v31 = vsub.f32 %v2240_v13, %v791_v50  ;;  %v1452_v13 = vld [vmem:[%s2437_s3 + $0x5] ss:$0 sm:$0xff] }
 0x25d   : > { %v795_v38 = vmax.f32 %v794_v3, 0.0  ;;  %v811_v37 = vsub.f32 %v2253_v58, %v791_v50  ;;  %v812_v45 = vsub.f32 %v2250_v60, %v791_v50  ;;  %v814_v14 = vsub.f32 %v2260_v18, %v791_v50 }
 0x25f   : > { %v796_v43 = vadd.f32 1e-05, %v795_v38 }
 0x261   : > { %1916 = vrsqrt.f32 %v796_v43  ;;  %v1180_v43 = vld [vmem:[#allocation2 + $0x130] sm:$0xff] }
 0x26b   : > { %v1917_v57 = vpop.eup %1916 }
 0x26c   : > { %v798_v5 = vmul.f32 %v1917_v57, %v731_v55  ;;  %v1181_v55 = vld [vmem:[#allocation2 + $0x138] sm:$0xff] }
 0x26d   : > { %v1857_v57 = vpack.c.bf16 %v1181_v55, %v1180_v43 }
 0x26e   : > { %v818_v1 = vrot.slane %v798_v5, %v2185_v10  ;;  %v1182_v5 = vld [vmem:[#allocation2 + $0x140] sm:$0xff] }
 0x270   : > { %v833_v15 = vmul.f32 %v818_v1, %v813_v56  ;;  %v819_v16 = vmul.f32 %v818_v1, %v799_v59  ;;  %v820_v48 = vmul.f32 %v818_v1, %v800_v61  ;;  %v821_v46 = vmul.f32 %v818_v1, %v801_v62 }
 0x271   : > { %v822_v53 = vmul.f32 %v818_v1, %v802_v63  ;;  %v823_v52 = vmul.f32 %v818_v1, %v803_v0  ;;  %v824_v60 = vmul.f32 %v818_v1, %v804_v6  ;;  %v825_v17 = vmul.f32 %v818_v1, %v805_v7 }
 0x272   : > { %v839_v58 = vadd.f32 %v1452_v13, %v819_v16  ;;  %v840_v4 = vadd.f32 %v1452_v13, %v820_v48  ;;  %v841_v19 = vadd.f32 %v1452_v13, %v821_v46  ;;  %v826_v2 = vmul.f32 %v818_v1, %v806_v8  ;;  %v1174_v8 = vld [vmem:[#allocation2 + $0x100] sm:$0xff]  ;;  %v1185_v16 = vld [vmem:[#allocation2 + $0x158] sm:$0xff] }
 0x273   : > { %v842_v18 = vadd.f32 %v1452_v13, %v822_v53  ;;  %v843_v21 = vadd.f32 %v1452_v13, %v823_v52  ;;  %v827_v23 = vmul.f32 %v818_v1, %v807_v9  ;;  %v828_v24 = vmul.f32 %v818_v1, %v808_v11  ;;  %v1175_v9 = vld [vmem:[#allocation2 + $0x108] sm:$0xff]  ;;  %v1186_v48 = vld [vmem:[#allocation2 + $0x160] sm:$0xff] }
 0x274   : > { %v855_v12 = vmax.f32 %v839_v58, 0.0  ;;  %v856_v20 = vmax.f32 %v840_v4, 0.0  ;;  %v857_v22 = vmax.f32 %v841_v19, 0.0  ;;  %v829_v25 = vmul.f32 %v818_v1, %v809_v33  ;;  %v1176_v33 = vld [vmem:[#allocation2 + $0x110] sm:$0xff]  ;;  %v1187_v53 = vld [vmem:[#allocation2 + $0x168] sm:$0xff] }
 0x275   : > { %v830_v26 = vmul.f32 %v818_v1, %v810_v31  ;;  %v831_v27 = vmul.f32 %v818_v1, %v811_v37  ;;  %v832_v28 = vmul.f32 %v818_v1, %v812_v45  ;;  %v834_v29 = vmul.f32 %v818_v1, %v814_v14  ;;  %v1177_v31 = vld [vmem:[#allocation2 + $0x118] sm:$0xff]  ;;  %v1178_v37 = vld [vmem:[#allocation2 + $0x120] sm:$0xff]  ;;  %v1179_v45 = vld [vmem:[#allocation2 + $0x128] sm:$0xff] }
 0x276   : > { %1693 = vmatprep.mubr.f32.mxu0 %v855_v12  ;;  %v858_v30 = vmax.f32 %v842_v18, 0.0  ;;  %v844_v32 = vadd.f32 %v1452_v13, %v824_v60  ;;  %v859_v34 = vmax.f32 %v843_v21, 0.0  ;;  %v845_v35 = vadd.f32 %v1452_v13, %v825_v17  ;;  %v1183_v1 = vld [vmem:[#allocation2 + $0x148] sm:$0xff]  ;;  %v1188_v60 = vld [vmem:[#allocation2 + $0x170] sm:$0xff]  ;;  %v1189_v17 = vld [vmem:[#allocation2 + $0x178] sm:$0xff] }
 0x277   : > { %1694 = vmatmul.mubr.f32.vlgmr.msra.gmra.mrb[16].mxu0 %v856_v20  ;;  %v846_v39 = vadd.f32 %v1452_v13, %v826_v2  ;;  %v847_v41 = vadd.f32 %v1452_v13, %v827_v23  ;;  %v848_v44 = vadd.f32 %v1452_v13, %v828_v24  ;;  %v849_v49 = vadd.f32 %v1452_v13, %v829_v25 }
 0x278   : > { %1696 = vmatprep.mubr.f32.mxu0 %v857_v22  ;;  %v860_v36 = vmax.f32 %v844_v32, 0.0  ;;  %v861_v40 = vmax.f32 %v845_v35, 0.0  ;;  %v850_v51 = vadd.f32 %v1452_v13, %v830_v26  ;;  %v851_v56 = vadd.f32 %v1452_v13, %v831_v27 }
 0x279   : > { %v862_v42 = vmax.f32 %v846_v39, 0.0  ;;  %v863_v47 = vmax.f32 %v847_v41, 0.0  ;;  %v864_v50 = vmax.f32 %v848_v44, 0.0  ;;  %v865_v54 = vmax.f32 %v849_v49, 0.0 }
 0x27a   : > { %v866_v59 = vmax.f32 %v850_v51, 0.0  ;;  %v852_v61 = vadd.f32 %v1452_v13, %v832_v28  ;;  %v867_v62 = vmax.f32 %v851_v56, 0.0  ;;  %v853_v63 = vadd.f32 %v1452_v13, %v833_v15  ;;  %v1184_v15 = vld [vmem:[#allocation2 + $0x150] sm:$0xff] }
 0x27b   : > { %1697 = vmatmul.mubr.f32.gmra.mrb[18].mxu0 %v858_v30  ;;  %v854_v3 = vadd.f32 %v1452_v13, %v834_v29  ;;  %v1845_v11 = vpack.c.bf16 %v1175_v9, %v1174_v8  ;;  %v1849_v38 = vpack.c.bf16 %v1177_v31, %v1176_v33  ;;  %v1853_v14 = vpack.c.bf16 %v1179_v45, %v1178_v37 }
 0x27c   : > { %1699 = vmatprep.mubr.f32.mxu0 %v859_v34  ;;  %v868_v0 = vmax.f32 %v852_v61, 0.0  ;;  %v869_v6 = vmax.f32 %v853_v63, 0.0  ;;  %v1861_v13 = vpack.c.bf16 %v1183_v1, %v1182_v5  ;;  %v1865_v46 = vpack.c.bf16 %v1185_v16, %v1184_v15 }
 0x27d   : > { %v870_v7 = vmax.f32 %v854_v3, 0.0  ;;  %1877 = vmatprep.subr.bf16.mxu1 %v1845_v11  ;;  %1846 = vmatprep.subr.bf16.mxu0 %v1845_v11  ;;  %v1869_v52 = vpack.c.bf16 %v1187_v53, %v1186_v48  ;;  %v1873_v58 = vpack.c.bf16 %v1189_v17, %v1188_v60 }
 0x27e   : > { %1885 = vmatpush3.bf16.msra.mxu1 %v1845_v11  ;;  %1848 = vmatpush3.bf16.msra.mxu0 %v1845_v11 }
 0x27f   : > { %1700 = vmatmul.mubr.f32.gmra.mrb[20].mxu0 %v860_v36  ;;  %1878 = vmatprep.subr.bf16.mxu1 %v1849_v38 }
 0x280   : > { %1702 = vmatprep.mubr.f32.mxu0 %v861_v40  ;;  %1850 = vmatprep.subr.bf16.mxu0 %v1849_v38 }
 0x282   : > { %1886 = vmatpush3.bf16.msra.mxu1 %v1849_v38  ;;  %1852 = vmatpush3.bf16.msra.mxu0 %v1849_v38 }
 0x283   : > { %1703 = vmatmul.mubr.f32.gmra.mrb[22].mxu0 %v862_v42  ;;  %1879 = vmatprep.subr.bf16.mxu1 %v1853_v14 }
 0x284   : > { %1705 = vmatprep.mubr.f32.mxu0 %v863_v47  ;;  %1854 = vmatprep.subr.bf16.mxu0 %v1853_v14 }
 0x286   : > { %1887 = vmatpush3.bf16.msra.mxu1 %v1853_v14  ;;  %1856 = vmatpush3.bf16.msra.mxu0 %v1853_v14 }
 0x287   : > { %1706 = vmatmul.mubr.f32.gmra.mrb[24].mxu0 %v864_v50  ;;  %1880 = vmatprep.subr.bf16.mxu1 %v1857_v57 }
 0x288   : > { %1708 = vmatprep.mubr.f32.mxu0 %v865_v54  ;;  %1858 = vmatprep.subr.bf16.mxu0 %v1857_v57 }
 0x28a   : > { %1888 = vmatpush3.bf16.msra.mxu1 %v1857_v57  ;;  %1860 = vmatpush3.bf16.msra.mxu0 %v1857_v57 }
 0x28b   : > { %1709 = vmatmul.mubr.f32.gmra.mrb[26].mxu0 %v866_v59  ;;  %1881 = vmatprep.subr.bf16.mxu1 %v1861_v13 }
 0x28c   : > { %1711 = vmatprep.mubr.f32.mxu0 %v867_v62  ;;  %1862 = vmatprep.subr.bf16.mxu0 %v1861_v13 }
 0x28e   : > { %1889 = vmatpush3.bf16.msra.mxu1 %v1861_v13  ;;  %1864 = vmatpush3.bf16.msra.mxu0 %v1861_v13 }
 0x28f   : > { %1712 = vmatmul.mubr.f32.gmra.mrb[28].mxu0 %v868_v0  ;;  %1882 = vmatprep.subr.bf16.mxu1 %v1865_v46 }
 0x290   : > { %1714 = vmatprep.mubr.f32.mxu0 %v869_v6  ;;  %1866 = vmatprep.subr.bf16.mxu0 %v1865_v46 }
 0x292   : > { %1890 = vmatpush3.bf16.msra.mxu1 %v1865_v46  ;;  %1868 = vmatpush3.bf16.msra.mxu0 %v1865_v46 }
 0x293   : > { %1715 = vmatmul.mubr.f32.gmra.mrb[30].mxu0 %v870_v7  ;;  %1883 = vmatprep.subr.bf16.mxu1 %v1869_v52 }
 0x294   : > { %1870 = vmatprep.subr.bf16.mxu0 %v1869_v52 }
 0x296   : > { %1891 = vmatpush3.bf16.msra.mxu1 %v1869_v52  ;;  %1872 = vmatpush3.bf16.msra.mxu0 %v1869_v52 }
 0x297   : > { %1884 = vmatprep.subr.bf16.mxu1 %v1873_v58  ;;  %1874 = vmatprep.subr.bf16.mxu0 %v1873_v58 }
 0x29a   : > { %1892 = vmatpush3.bf16.msra.mxu1 %v1873_v58  ;;  %1876 = vmatpush3.bf16.msra.mxu0 %v1873_v58 }
 0x34a   : > { %v2288_v4 = vpop.f32.mrb[16].mxu0 }
 0x34b   : > { %v1057_v19 = vmul.f32 %v2288_v4, %v2288_v4  ;;  %v2292_v2 = vpop.f32.mrb[17].mxu0 }
 0x34c   : > { %v1035_v12 = vadd.f32 %v2288_v4, %v2292_v2  ;;  %v1056_v20 = vmul.f32 %v2292_v2, %v2292_v2 }
 0x34e   : > { %v1072_v18 = vadd.f32 %v1057_v19, %v1056_v20  ;;  %v2298_v21 = vpop.f32.mrb[18].mxu0 }
 0x34f   : > { %v2300_v22 = vpop.f32.mrb[19].mxu0  ;;  %v1059_v25 = vmul.f32 %v2298_v21, %v2298_v21 }
 0x350   : > { %v1036_v23 = vadd.f32 %v1035_v12, %v2300_v22  ;;  %v1058_v24 = vmul.f32 %v2300_v22, %v2300_v22 }
 0x352   : > { %v1073_v26 = vadd.f32 %v1072_v18, %v1058_v24  ;;  %v2307_v27 = vpop.f32.mrb[20].mxu0  ;;  %v1037_v28 = vadd.f32 %v2298_v21, %v1036_v23 }
 0x353   : > { %v2310_v29 = vpop.f32.mrb[21].mxu0  ;;  %v1061_v35 = vmul.f32 %v2307_v27, %v2307_v27 }
 0x354   : > { %v1038_v30 = vadd.f32 %v1037_v28, %v2310_v29  ;;  %v1060_v32 = vmul.f32 %v2310_v29, %v2310_v29  ;;  %v1074_v34 = vadd.f32 %v1073_v26, %v1059_v25 }
 0x356   : > { %v1075_v36 = vadd.f32 %v1074_v34, %v1060_v32  ;;  %v2317_v39 = vpop.f32.mrb[22].mxu0  ;;  %v1039_v40 = vadd.f32 %v2307_v27, %v1038_v30 }
 0x357   : > { %v2320_v41 = vpop.f32.mrb[23].mxu0  ;;  %v1063_v49 = vmul.f32 %v2317_v39, %v2317_v39 }
 0x358   : > { %v1040_v42 = vadd.f32 %v1039_v40, %v2320_v41  ;;  %v1062_v44 = vmul.f32 %v2320_v41, %v2320_v41  ;;  %v1076_v47 = vadd.f32 %v1075_v36, %v1061_v35 }
 0x35a   : > { %v1077_v50 = vadd.f32 %v1076_v47, %v1062_v44  ;;  %v2327_v51 = vpop.f32.mrb[24].mxu0  ;;  %v1041_v54 = vadd.f32 %v2317_v39, %v1040_v42 }
 0x35b   : > { %v2330_v56 = vpop.f32.mrb[25].mxu0  ;;  %v1065_v63 = vmul.f32 %v2327_v51, %v2327_v51 }
 0x35c   : > { %v1042_v59 = vadd.f32 %v1041_v54, %v2330_v56  ;;  %v1064_v61 = vmul.f32 %v2330_v56, %v2330_v56  ;;  %v1078_v62 = vadd.f32 %v1077_v50, %v1063_v49 }
 0x35e   : > { %v1079_v0 = vadd.f32 %v1078_v62, %v1064_v61  ;;  %v2337_v3 = vpop.f32.mrb[26].mxu0  ;;  %v1043_v6 = vadd.f32 %v2327_v51, %v1042_v59 }
 0x35f   : > { %v2340_v7 = vpop.f32.mrb[27].mxu0  ;;  %v1067_v33 = vmul.f32 %v2337_v3, %v2337_v3 }
 0x360   : > { %v1044_v8 = vadd.f32 %v1043_v6, %v2340_v7  ;;  %v1066_v9 = vmul.f32 %v2340_v7, %v2340_v7  ;;  %v1080_v11 = vadd.f32 %v1079_v0, %v1065_v63  ;;  %v1033_v63 = vld [vmem:[%s2437_s3 + $0x3] sm:$0x1]  ;;  %v1453_v6 = vld [vmem:[%s2437_s3 + $0x6] ss:$0 sm:$0xff] }
 0x362   : > { %v1081_v31 = vadd.f32 %v1080_v11, %v1066_v9  ;;  %v2347_v38 = vpop.f32.mrb[28].mxu0  ;;  %v1045_v37 = vadd.f32 %v2337_v3, %v1044_v8 }
 0x363   : > { %v2350_v45 = vpop.f32.mrb[29].mxu0  ;;  %v1069_v57 = vmul.f32 %v2347_v38, %v2347_v38 }
 0x364   : > { %v1046_v14 = vadd.f32 %v1045_v37, %v2350_v45  ;;  %v1068_v43 = vmul.f32 %v2350_v45, %v2350_v45  ;;  %v1082_v55 = vadd.f32 %v1081_v31, %v1067_v33 }
 0x366   : > { %v1083_v5 = vadd.f32 %v1082_v55, %v1068_v43  ;;  %v2357_v1 = vpop.f32.mrb[30].mxu0  ;;  %v1047_v13 = vadd.f32 %v2347_v38, %v1046_v14 }
 0x367   : > { %v1024_v15 = vpop.f32.mrb[31].mxu0  ;;  %v1071_v53 = vmul.f32 %v2357_v1, %v2357_v1 }
 0x368   : > { %v1048_v16 = vadd.f32 %v1047_v13, %v1024_v15  ;;  %v1070_v48 = vmul.f32 %v1024_v15, %v1024_v15  ;;  %v1084_v46 = vadd.f32 %v1083_v5, %v1069_v57 }
 0x36a   : > { %v1049_v52 = vadd.f32 %v2357_v1, %v1048_v16  ;;  %v1085_v60 = vadd.f32 %v1084_v46, %v1070_v48 }
 0x36c   : > { %v1050_v17 = vrot.slane %v1049_v52, 4  ;;  %v1086_v58 = vadd.f32 %v1085_v60, %v1071_v53 }
 0x36e   : > { %v1051_v19 = vadd.f32 %v1050_v17, %v1049_v52  ;;  %v1087_v12 = vrot.slane %v1086_v58, 4 }
 0x370   : > { %v1052_v20 = vrot.slane %v1051_v19, 2  ;;  %v1088_v18 = vadd.f32 %v1087_v12, %v1086_v58 }
 0x372   : > { %v1053_v23 = vadd.f32 %v1052_v20, %v1051_v19  ;;  %v1089_v24 = vrot.slane %v1088_v18, 2 }
 0x374   : > { %v1054_v25 = vrot.slane %v1053_v23, 1  ;;  %v1090_v26 = vadd.f32 %v1089_v24, %v1088_v18 }
 0x376   : > { %v1055_v28 = vadd.f32 %v1054_v25, %v1053_v23  ;;  %v1091_v30 = vrot.slane %v1090_v26, 1 }
 0x378   : > { %v1092_v32 = vadd.f32 %v1091_v30, %v1090_v26  ;;  %v2363_v34 = vmul.f32 0.0078125, %v1055_v28 }
 0x37a   : > { %v1094_v35 = vmul.f32 0.0078125, %v1092_v32  ;;  %v1095_v36 = vmul.f32 %v2363_v34, %v2363_v34  ;;  %v1115_v40 = vsub.f32 %v1024_v15, %v2363_v34  ;;  %v1101_v42 = vsub.f32 %v2292_v2, %v2363_v34 }
 0x37b   : > { %v1107_v44 = vsub.f32 %v2320_v41, %v2363_v34  ;;  %v1102_v47 = vsub.f32 %v2288_v4, %v2363_v34  ;;  %v1108_v49 = vsub.f32 %v2317_v39, %v2363_v34  ;;  %v1103_v50 = vsub.f32 %v2300_v22, %v2363_v34 }
 0x37c   : > { %v1096_v54 = vsub.f32 %v1094_v35, %v1095_v36  ;;  %v1109_v59 = vsub.f32 %v2330_v56, %v2363_v34  ;;  %v1104_v61 = vsub.f32 %v2298_v21, %v2363_v34  ;;  %v1110_v2 = vsub.f32 %v2327_v51, %v2363_v34 }
 0x37d   : > { %v1105_v41 = vsub.f32 %v2310_v29, %v2363_v34  ;;  %v1111_v4 = vsub.f32 %v2340_v7, %v2363_v34  ;;  %v1106_v39 = vsub.f32 %v2307_v27, %v2363_v34  ;;  %v1112_v22 = vsub.f32 %v2337_v3, %v2363_v34 }
 0x37e   : > { %v1097_v62 = vmax.f32 %v1096_v54, 0.0  ;;  %v1113_v56 = vsub.f32 %v2350_v45, %v2363_v34  ;;  %v1114_v21 = vsub.f32 %v2347_v38, %v2363_v34  ;;  %v1116_v51 = vsub.f32 %v2357_v1, %v2363_v34 }
 0x380   : > { %v1098_v29 = vadd.f32 1e-05, %v1097_v62 }
 0x382   : > { %1918 = vrsqrt.f32 %v1098_v29 }
 0x38c   : > { %v1919_v27 = vpop.eup %1918 }
 0x38d   : > { %v1100_v0 = vmul.f32 %v1919_v27, %v1033_v63 }
 0x38f   : > { %v1120_v3 = vrot.slane %v1100_v0, %v2185_v10 }
 0x391   : > { %v1135_v7 = vmul.f32 %v1120_v3, %v1115_v40  ;;  %v1121_v8 = vmul.f32 %v1120_v3, %v1101_v42  ;;  %v1127_v9 = vmul.f32 %v1120_v3, %v1107_v44  ;;  %v1122_v11 = vmul.f32 %v1120_v3, %v1102_v47 }
 0x392   : > { %v1128_v33 = vmul.f32 %v1120_v3, %v1108_v49  ;;  %v1123_v31 = vmul.f32 %v1120_v3, %v1103_v50  ;;  %v1129_v38 = vmul.f32 %v1120_v3, %v1109_v59  ;;  %v1124_v37 = vmul.f32 %v1120_v3, %v1104_v61  ;;  %v1454_v61 = vld [vmem:[%s2437_s3] ss:$0 sm:$0xff] }
 0x393   : > { %v1141_v45 = vadd.f32 %v1453_v6, %v1121_v8  ;;  %v1147_v14 = vadd.f32 %v1453_v6, %v1127_v9  ;;  %v1142_v43 = vadd.f32 %v1453_v6, %v1122_v11  ;;  %v1130_v55 = vmul.f32 %v1120_v3, %v1110_v2 }
 0x394   : > { %v1148_v57 = vadd.f32 %v1453_v6, %v1128_v33  ;;  %v1143_v5 = vadd.f32 %v1453_v6, %v1123_v31  ;;  %v1149_v1 = vadd.f32 %v1453_v6, %v1129_v38  ;;  %v1144_v46 = vadd.f32 %v1453_v6, %v1124_v37 }
 0x395   : > { %v1157_v10 = vmax.f32 %v1141_v45, 0.0  ;;  %v1163_v13 = vmax.f32 %v1147_v14, 0.0  ;;  %v1158_v15 = vmax.f32 %v1142_v43, 0.0  ;;  %v1150_v53 = vadd.f32 %v1453_v6, %v1130_v55 }
 0x396   : > { %v1164_v16 = vmax.f32 %v1148_v57, 0.0  ;;  %v1159_v48 = vmax.f32 %v1143_v5, 0.0  ;;  %v1165_v52 = vmax.f32 %v1149_v1, 0.0  ;;  %v1125_v60 = vmul.f32 %v1120_v3, %v1105_v41 }
 0x397   : > { %1749 = vmatprep.mubr.f32.mxu0 %v1157_v10  ;;  %1758 = vmatprep.mubr.f32.mxu1 %v1163_v13  ;;  %v1131_v17 = vmul.f32 %v1120_v3, %v1111_v4  ;;  %v1126_v58 = vmul.f32 %v1120_v3, %v1106_v39  ;;  %v1132_v19 = vmul.f32 %v1120_v3, %v1112_v22  ;;  %v1160_v24 = vmax.f32 %v1144_v46, 0.0 }
 0x398   : > { %1750 = vmatmul.mubr.f32.vlgmr.msra.gmra.mrb[32].mxu0 %v1158_v15  ;;  %1759 = vmatmul.mubr.f32.vlgmr.msra.gmra.mrb[16].mxu1 %v1164_v16  ;;  %v1133_v12 = vmul.f32 %v1120_v3, %v1113_v56  ;;  %v1134_v20 = vmul.f32 %v1120_v3, %v1114_v21  ;;  %v1145_v18 = vadd.f32 %v1453_v6, %v1125_v60  ;;  %v1166_v25 = vmax.f32 %v1150_v53, 0.0 }
 0x399   : > { %1752 = vmatprep.mubr.f32.mxu0 %v1159_v48  ;;  %1761 = vmatprep.mubr.f32.mxu1 %v1165_v52  ;;  %v1151_v23 = vadd.f32 %v1453_v6, %v1131_v17  ;;  %v1146_v26 = vadd.f32 %v1453_v6, %v1126_v58  ;;  %v1152_v28 = vadd.f32 %v1453_v6, %v1132_v19 }
 0x39a   : > { %v1161_v30 = vmax.f32 %v1145_v18, 0.0  ;;  %v1153_v34 = vadd.f32 %v1453_v6, %v1133_v12  ;;  %v1136_v35 = vmul.f32 %v1120_v3, %v1116_v51  ;;  %v1154_v42 = vadd.f32 %v1453_v6, %v1134_v20 }
 0x39b   : > { %v1167_v32 = vmax.f32 %v1151_v23, 0.0  ;;  %v1162_v36 = vmax.f32 %v1146_v26, 0.0  ;;  %v1168_v40 = vmax.f32 %v1152_v28, 0.0  ;;  %v1155_v47 = vadd.f32 %v1453_v6, %v1135_v7 }
 0x39c   : > { %1753 = vmatmul.mubr.f32.gmra.mrb[34].mxu0 %v1160_v24  ;;  %1762 = vmatmul.mubr.f32.gmra.mrb[18].mxu1 %v1166_v25  ;;  %v1169_v44 = vmax.f32 %v1153_v34, 0.0  ;;  %v1170_v49 = vmax.f32 %v1154_v42, 0.0  ;;  %v1156_v50 = vadd.f32 %v1453_v6, %v1136_v35 }
 0x39d   : > { %1755 = vmatprep.mubr.f32.mxu0 %v1161_v30  ;;  %1764 = vmatprep.mubr.f32.mxu1 %v1167_v32  ;;  %v1171_v54 = vmax.f32 %v1155_v47, 0.0 }
 0x39e   : > { %v1172_v59 = vmax.f32 %v1156_v50, 0.0 }
 0x3a0   : > { %1756 = vmatmul.mubr.f32.gmra.mrb[36].mxu0 %v1162_v36  ;;  %1765 = vmatmul.mubr.f32.gmra.mrb[20].mxu1 %v1168_v40 }
 0x3a1   : > { %1767 = vmatprep.mubr.f32.mxu1 %v1169_v44 }
 0x3a4   : > { %1768 = vmatmul.mubr.f32.gmra.mrb[22].mxu1 %v1170_v49 }
 0x3a5   : > { %1770 = vmatprep.mubr.f32.mxu1 %v1171_v54 }
 0x3a8   : > { %1771 = vmatmul.mubr.f32.gmra.mrb[24].mxu1 %v1172_v59 }
 0x46b   : > { %v1751_v2 = vpop.f32.mrb[32].mxu0  ;;  %v1760_v41 = vpop.f32.mrb[16].mxu1 }
 0x46c   : > { %v1267_v4 = vadd.f32 %v1751_v2, %v1454_v61  ;;  %v1297_v39 = vadd.f32 %v1760_v41, %v1454_v61  ;;  %v1261_v22 = vpop.f32.mrb[33].mxu0  ;;  %v1291_v62 = vpop.f32.mrb[17].mxu1 }
 0x46d   : > { %v1262_v56 = vadd.f32 %v1454_v61, %v1261_v22  ;;  %v1292_v21 = vadd.f32 %v1454_v61, %v1291_v62 }
 0x46e   : > { %1341 = vst [vmem:[%s2413_s14 + $0x8] sm:$0xff] %v1267_v4  ;;  %1347 = vst [vmem:[%s2413_s14 + $0x38] sm:$0xff] %v1297_v39 }
 0x46f   : > { %1340 = vst [vmem:[%s2413_s14] sm:$0xff] %v1262_v56  ;;  %1346 = vst [vmem:[%s2413_s14 + $0x30] sm:$0xff] %v1292_v21  ;;  %v1754_v51 = vpop.f32.mrb[34].mxu0  ;;  %v1763_v29 = vpop.f32.mrb[18].mxu1 }
 0x470   : > { %v1277_v63 = vadd.f32 %v1754_v51, %v1454_v61  ;;  %v1307_v27 = vadd.f32 %v1763_v29, %v1454_v61  ;;  %v1271_v0 = vpop.f32.mrb[35].mxu0  ;;  %v1301_v3 = vpop.f32.mrb[19].mxu1 }
 0x471   : > { %v1272_v6 = vadd.f32 %v1454_v61, %v1271_v0  ;;  %v1302_v7 = vadd.f32 %v1454_v61, %v1301_v3 }
 0x472   : > { %1343 = vst [vmem:[%s2413_s14 + $0x18] sm:$0xff] %v1277_v63  ;;  %1349 = vst [vmem:[%s2413_s14 + $0x48] sm:$0xff] %v1307_v27 }
 0x473   : > { %1342 = vst [vmem:[%s2413_s14 + $0x10] sm:$0xff] %v1272_v6  ;;  %1348 = vst [vmem:[%s2413_s14 + $0x40] sm:$0xff] %v1302_v7  ;;  %v1757_v8 = vpop.f32.mrb[36].mxu0  ;;  %v1766_v9 = vpop.f32.mrb[20].mxu1 }
 0x474   : > { %v1287_v11 = vadd.f32 %v1757_v8, %v1454_v61  ;;  %v1317_v33 = vadd.f32 %v1766_v9, %v1454_v61  ;;  %v1281_v31 = vpop.f32.mrb[37].mxu0  ;;  %v1311_v38 = vpop.f32.mrb[21].mxu1 }
 0x475   : > { %v1282_v37 = vadd.f32 %v1454_v61, %v1281_v31  ;;  %v1312_v45 = vadd.f32 %v1454_v61, %v1311_v38 }
 0x476   : > { %1345 = vst [vmem:[%s2413_s14 + $0x28] sm:$0xff] %v1287_v11  ;;  %1351 = vst [vmem:[%s2413_s14 + $0x58] sm:$0xff] %v1317_v33 }
 0x477   : > { %1344 = vst [vmem:[%s2413_s14 + $0x20] sm:$0xff] %v1282_v37  ;;  %1350 = vst [vmem:[%s2413_s14 + $0x50] sm:$0xff] %v1312_v45  ;;  %v1769_v14 = vpop.f32.mrb[22].mxu1 }
 0x478   : > { %v1327_v43 = vadd.f32 %v1769_v14, %v1454_v61  ;;  %v1321_v55 = vpop.f32.mrb[23].mxu1 }
 0x479   : > { %v1322_v57 = vadd.f32 %v1454_v61, %v1321_v55 }
 0x47a   : > { %1353 = vst [vmem:[%s2413_s14 + $0x68] sm:$0xff] %v1327_v43 }
 0x47b   : > { %1352 = vst [vmem:[%s2413_s14 + $0x60] sm:$0xff] %v1322_v57  ;;  %v1772_v5 = vpop.f32.mrb[24].mxu1 }
 0x47c   : > { %v1337_v1 = vadd.f32 %v1772_v5, %v1454_v61  ;;  %v1331_v10 = vpop.f32.mrb[25].mxu1 }
 0x47d   : > { %v1332_v13 = vadd.f32 %v1454_v61, %v1331_v10 }
 0x47e   : > { %1355 = vst [vmem:[%s2413_s14 + $0x78] sm:$0xff] %v1337_v1 }
 0x47f   : > { %1354 = vst [vmem:[%s2413_s14 + $0x70] sm:$0xff] %v1332_v13 }
 0x480 PF: > { %s15_s15 = sadd.s32 1, %s1958_s15  }
 0x481   : > { %p12_p3 = scmp.ge.s32.totalorder %s15_s15, 4  }
 0x483   :  { %14 = sbr.rel (!%p12_p3) target bundleno = 1 (0x1), region = 73 }
 0x48a   :  { %1378 = vsyncpa [#allocation3], 1 }
 0x48b   :  { %1380 = vsyncpa [#allocation3 + $0x1], 1 }

</bundles_post_ra>
